<compile_context>
chip_gen: v7x
topology: tpu7x:2x2x1
jax: 0.10.0
libtpu: 0.0.40
codegen_flags: <defaults>
</compile_context>

<pallas_src>
import math

import jax
import jax.numpy as jnp
from jax.experimental import pallas as pl
from jax.experimental.pallas import tpu as pltpu


NEG_SLOPE = 0.01  # torch.nn.LeakyReLU() default


def _leaky_relu(x):
    return jnp.where(x >= 0, x, NEG_SLOPE * x)


def _round_up(n, m):
    return ((n + m - 1) // m) * m


def spam_mlp_kernel(x_ref, w1_ref, b1_ref, w2_ref, b2_ref, w3_ref, b3_ref, o_ref):
    cdt = w1_ref.dtype   # MXU input dtype (bf16 by default, f32 if requested)
    edt = b1_ref.dtype   # elementwise dtype (bf16 on v6e/v7x, f32 for v5e)

    # In-kernel cast of the f32 x tile (hidden under the tile DMA / MXU work).
    x = x_ref[...].astype(cdt)                                   # (TB, D)

    # fc1: (TB, D) @ (D, 128), f32 accumulation on the MXU; bias + LeakyReLU
    # in the (narrow) elementwise dtype so the intermediate is 2 B/elem.
    h1 = jnp.dot(x, w1_ref[...], preferred_element_type=jnp.float32)
    h1 = _leaky_relu(h1.astype(edt) + b1_ref[...])               # (TB, 128)

    # fc2 (64 hidden cols padded to 128 lanes; padded cols stay exactly 0).
    h2 = jnp.dot(h1.astype(cdt), w2_ref[...], preferred_element_type=jnp.float32)
    h2 = _leaky_relu(h2.astype(edt) + b2_ref[...])               # (TB, 128)

    # fc3: contract the lane dims of w3 (1,128) and h2 (TB,128) directly ->
    # (1, TB) lane-dense logits, no explicit transpose / XLU work.
    logits = jax.lax.dot_general(
        w3_ref[...], h2.astype(cdt),
        dimension_numbers=(((1,), (1,)), ((), ())),
        preferred_element_type=jnp.float32) + b3_ref[0]          # (1, TB)

    # Exact sigmoid on the tiny (1, TB) logits (exp -> EUP, f32 divide is
    # negligible) so probabilities match the f32 reference near the threshold.
    o_ref[...] = (1.0 / (1.0 + jnp.exp(-logits))).astype(o_ref.dtype)


def _choose_block_b(B, D, cdt_size, edt_size):
    """VMEM-aware batch tile size; prefers >=2 (even) tiles for v7x megacore."""
    # Per-row VMEM: double-buffered f32 x tile + f32 accums and narrow copies
    # of the two (row,128) intermediates + double-buffered f32 output lane.
    per_row = 2 * D * 4 + 2 * 128 * (4 + edt_size + cdt_size) + 2 * 4
    budget = 8 * 1024 * 1024
    tb = (budget // per_row) // 128 * 128
    tb = max(128, min(2048, tb))
    if B > 128:
        # >= 2 tiles (even count) so "parallel" can shard across 2 TensorCores
        # and the first x DMA overlaps compute instead of being fully exposed.
        tiles = max(2, -(-B // tb))
        if tiles % 2:
            tiles += 1
        tb = min(tb, max(128, _round_up(-(-B // tiles), 128)))
    return tb


def spam_detection_nn(x, params, *, block_b=None, compute_dtype=jnp.bfloat16,
                      elementwise_dtype=None):
    """Forward pass of SpamDetectionNN.

    x:      (B, input_size) float32 (passed to the kernel uncast / unpadded)
    params: (w1 (D,128), b1 (1,128), w2 (128,64), b2 (1,64), w3 (64,1), b3 (1,1))
    returns (B, 1) float32 probabilities.

    For v5e (no bf16 VPU/EUP) pass elementwise_dtype=jnp.float32 (or
    compute_dtype=jnp.float32 to keep the MXU in f32 as well).
    """
    w1, b1, w2, b2, w3, b3 = params
    B, D = x.shape
    cdt = jnp.dtype(compute_dtype)
    edt = jnp.dtype(elementwise_dtype) if elementwise_dtype is not None else cdt

    # ---- weight packing (once, outside the kernel; pre-pack in production) --
    # Pad the 64-wide hidden layer to 128 lanes (zeros) and store fc3 as a row.
    w2p = jnp.zeros((128, 128), w2.dtype).at[:, :64].set(w2)
    b2p = jnp.zeros((1, 128), b2.dtype).at[:, :64].set(b2)
    w3r = jnp.zeros((1, 128), w3.dtype).at[:, :64].set(w3.T)

    w1c = w1.astype(cdt)
    w2c = w2p.astype(cdt)
    w3c = w3r.astype(cdt)
    b1c = b1.astype(edt)
    b2c = b2p.astype(edt)
    b3c = b3.reshape(1).astype(jnp.float32)      # SMEM scalar

    # ---- batch tile size ----------------------------------------------------
    if block_b is None:
        block_b = _choose_block_b(B, D, cdt.itemsize, edt.itemsize)
    block_b = max(128, _round_up(block_b, 128))  # lane-dense, (8,128)-legal
    num_tiles = -(-B // block_b)                 # ragged last tile is fine

    # ---- VMEM accounting (explicit; v7x only has 64 MiB physical) -----------
    x_tile_bytes = block_b * D * 4
    out_tile_bytes = block_b * 4
    w_bytes = ((w1c.size + w2c.size + w3c.size) * cdt.itemsize
               + (b1c.size + b2c.size) * edt.itemsize)
    interm_bytes = 2 * block_b * 128 * (4 + edt.itemsize + cdt.itemsize)
    vmem_limit = (2 * x_tile_bytes + 2 * out_tile_bytes + 2 * w_bytes
                  + interm_bytes + (8 << 20))
    vmem_limit = int(min(max(vmem_limit, 16 << 20), 64 << 20))

    # ---- specs ---------------------------------------------------------------
    def const_spec(shape):
        nd = len(shape)
        # Block index never changes -> single-buffer (no dead second VMEM copy).
        return pl.BlockSpec(shape, lambda *_: (0,) * nd,
                            pipeline_mode=pl.Buffered(1))

    flops = 2 * B * (D * 128 + 128 * 128 + 128)
    bytes_accessed = (B * D * 4 + w_bytes + b3c.size * 4 + B * 4)

    out = pl.pallas_call(
        spam_mlp_kernel,
        out_shape=jax.ShapeDtypeStruct((1, B), jnp.float32),
        grid_spec=pltpu.PrefetchScalarGridSpec(
            num_scalar_prefetch=0,
            grid=(num_tiles,),
            in_specs=[
                pl.BlockSpec((block_b, D), lambda i: (i, 0)),   # pipelined x tile
                const_spec(w1c.shape), const_spec(b1c.shape),   # resident weights
                const_spec(w2c.shape), const_spec(b2c.shape),
                const_spec(w3c.shape),
                pl.BlockSpec(memory_space=pltpu.MemorySpace.SMEM),  # b3 scalar
            ],
            out_specs=pl.BlockSpec((1, block_b), lambda i: (0, i)),
        ),
        compiler_params=pltpu.CompilerParams(
            dimension_semantics=("parallel",),   # batch tiles are independent
            vmem_limit_bytes=vmem_limit,
        ),
        cost_estimate=pl.CostEstimate(
            flops=flops, transcendentals=B, bytes_accessed=bytes_accessed),
    )(x, w1c, b1c, w2c, b2c, w3c, b3c)

    # (1, B) lane-dense probabilities -> (B, 1); trivial contiguous reshape.
    return out.reshape(B, 1)


def init_params(key, input_size):
    """Mimics PyTorch's default Linear init: U(-1/sqrt(fan_in), 1/sqrt(fan_in))."""
    dims = [(input_size, 128), (128, 64), (64, 1)]
    params = []
    for (fan_in, fan_out) in dims:
        key, kw, kb = jax.random.split(key, 3)
        bound = 1.0 / math.sqrt(fan_in)
        w = jax.random.uniform(kw, (fan_in, fan_out), jnp.float32, -bound, bound)
        b = jax.random.uniform(kb, (1, fan_out), jnp.float32, -bound, bound)
        params += [w, b]
    return tuple(params)


def reference_forward(x, params):
    w1, b1, w2, b2, w3, b3 = params
    h1 = _leaky_relu(x @ w1 + b1)
    h2 = _leaky_relu(h1 @ w2 + b2)
    return jax.nn.sigmoid(h2 @ w3 + b3)


if __name__ == "__main__":
    key = jax.random.PRNGKey(0)
    input_size = 32
    batch = 300   # not a multiple of the tile -> exercises the ragged last block

    k_x, k_p = jax.random.split(key)
    x = jax.random.normal(k_x, (batch, input_size), jnp.float32)
    params = init_params(k_p, input_size)
    ref = reference_forward(x, params)

    # Default path: bf16 MXU + bf16 elementwise (v6e / v7x), auto tile sizing
    # (picks 2 balanced tiles here so the grid can span both v7x TensorCores).
    out = jax.block_until_ready(spam_detection_nn(x, params))
    assert out.shape == (batch, 1), out.shape
    assert jnp.allclose(out, ref, atol=2e-2, rtol=2e-2), \
        float(jnp.max(jnp.abs(out - ref)))

    # v5e-style path: everything in f32 (no bf16 VPU/EUP there).
    out32 = jax.block_until_ready(
        spam_detection_nn(x, params, compute_dtype=jnp.float32))
    assert jnp.allclose(out32, ref, atol=1e-5, rtol=1e-5), \
        float(jnp.max(jnp.abs(out32 - ref)))

    print("KERNEL_OK")
</pallas_src>

<mosaic_0001>
module attributes {stable_mosaic.version = 11 : i64} {
  func.func @spam_mlp_kernel(%arg0: i32, %arg1: memref<256x32xf32, #tpu.memory_space<vmem>>, %arg2: memref<32x128xbf16, #tpu.memory_space<vmem>>, %arg3: memref<1x128xbf16, #tpu.memory_space<vmem>>, %arg4: memref<128x128xbf16, #tpu.memory_space<vmem>>, %arg5: memref<1x128xbf16, #tpu.memory_space<vmem>>, %arg6: memref<1x128xbf16, #tpu.memory_space<vmem>>, %arg7: memref<1xf32, #tpu.memory_space<smem>>, %arg8: memref<1x256xf32, #tpu.memory_space<vmem>>) attributes {dimension_semantics = [#tpu.dimension_semantics<parallel>], iteration_bounds = array<i64: 2>, scalar_prefetch = 0 : i64, scratch_operands = 0 : i64, tpu.core_type = #tpu.core_type<tc>, window_params = [{transform_indices = @transform_0, window_bounds = array<i64: 256, 32>}, {pipeline_mode = #tpu.pipeline_mode<synchronous>, transform_indices = @transform_1, window_bounds = array<i64: 32, 128>}, {pipeline_mode = #tpu.pipeline_mode<synchronous>, transform_indices = @transform_2, window_bounds = array<i64: 1, 128>}, {pipeline_mode = #tpu.pipeline_mode<synchronous>, transform_indices = @transform_3, window_bounds = array<i64: 128, 128>}, {pipeline_mode = #tpu.pipeline_mode<synchronous>, transform_indices = @transform_4, window_bounds = array<i64: 1, 128>}, {pipeline_mode = #tpu.pipeline_mode<synchronous>, transform_indices = @transform_5, window_bounds = array<i64: 1, 128>}, {transform_indices = @transform_6, window_bounds = array<i64: 1>}, {transform_indices = @transform_7, window_bounds = array<i64: 1, 256>}]} {
    %c0 = arith.constant 0 : index
    %c0_0 = arith.constant 0 : index
    %0 = vector.load %arg1[%c0, %c0_0] : memref<256x32xf32, #tpu.memory_space<vmem>>, vector<256x32xf32>
    %1 = arith.truncf %0 : vector<256x32xf32> to vector<256x32xbf16>
    %c0_1 = arith.constant 0 : index
    %c0_2 = arith.constant 0 : index
    %2 = vector.load %arg2[%c0_1, %c0_2] : memref<32x128xbf16, #tpu.memory_space<vmem>>, vector<32x128xbf16>
    %cst = arith.constant dense<0.000000e+00> : vector<256x128xf32>
    %3 = tpu.matmul %1, %2, %cst {dimension_numbers = #tpu.dot_dimension_numbers<[1], [0], [0], [1], [0, 0, 1, 1], [], []>} : vector<256x32xbf16>, vector<32x128xbf16>, vector<256x128xf32> -> vector<256x128xf32>
    %4 = arith.truncf %3 : vector<256x128xf32> to vector<256x128xbf16>
    %c0_3 = arith.constant 0 : index
    %c0_4 = arith.constant 0 : index
    %5 = vector.load %arg3[%c0_3, %c0_4] : memref<1x128xbf16, #tpu.memory_space<vmem>>, vector<1x128xbf16>
    %6 = vector.broadcast %5 : vector<1x128xbf16> to vector<256x128xbf16>
    %7 = arith.addf %4, %6 : vector<256x128xbf16>
    %cst_5 = arith.constant 0.000000e+00 : bf16
    %8 = vector.broadcast %cst_5 : bf16 to vector<256x128xbf16>
    %9 = arith.cmpf oge, %7, %8 : vector<256x128xbf16>
    %cst_6 = arith.constant 1.000980e-02 : bf16
    %10 = vector.broadcast %cst_6 : bf16 to vector<256x128xbf16>
    %11 = arith.mulf %10, %7 : vector<256x128xbf16>
    %12 = arith.select %9, %7, %11 : vector<256x128xi1>, vector<256x128xbf16>
    %c0_7 = arith.constant 0 : index
    %c0_8 = arith.constant 0 : index
    %13 = vector.load %arg4[%c0_7, %c0_8] : memref<128x128xbf16, #tpu.memory_space<vmem>>, vector<128x128xbf16>
    %cst_9 = arith.constant dense<0.000000e+00> : vector<256x128xf32>
    %14 = tpu.matmul %12, %13, %cst_9 {dimension_numbers = #tpu.dot_dimension_numbers<[1], [0], [0], [1], [0, 0, 1, 1], [], []>} : vector<256x128xbf16>, vector<128x128xbf16>, vector<256x128xf32> -> vector<256x128xf32>
    %15 = arith.truncf %14 : vector<256x128xf32> to vector<256x128xbf16>
    %c0_10 = arith.constant 0 : index
    %c0_11 = arith.constant 0 : index
    %16 = vector.load %arg5[%c0_10, %c0_11] : memref<1x128xbf16, #tpu.memory_space<vmem>>, vector<1x128xbf16>
    %17 = vector.broadcast %16 : vector<1x128xbf16> to vector<256x128xbf16>
    %18 = arith.addf %15, %17 : vector<256x128xbf16>
    %cst_12 = arith.constant 0.000000e+00 : bf16
    %19 = vector.broadcast %cst_12 : bf16 to vector<256x128xbf16>
    %20 = arith.cmpf oge, %18, %19 : vector<256x128xbf16>
    %cst_13 = arith.constant 1.000980e-02 : bf16
    %21 = vector.broadcast %cst_13 : bf16 to vector<256x128xbf16>
    %22 = arith.mulf %21, %18 : vector<256x128xbf16>
    %23 = arith.select %20, %18, %22 : vector<256x128xi1>, vector<256x128xbf16>
    %c0_14 = arith.constant 0 : index
    %c0_15 = arith.constant 0 : index
    %24 = vector.load %arg6[%c0_14, %c0_15] : memref<1x128xbf16, #tpu.memory_space<vmem>>, vector<1x128xbf16>
    %cst_16 = arith.constant dense<0.000000e+00> : vector<1x256xf32>
    %25 = tpu.matmul %24, %23, %cst_16 {dimension_numbers = #tpu.dot_dimension_numbers<[1], [1], [0], [0], [0, 0, 1, 0], [], []>} : vector<1x128xbf16>, vector<256x128xbf16>, vector<1x256xf32> -> vector<1x256xf32>
    %c0_17 = arith.constant 0 : index
    %26 = memref.load %arg7[%c0_17] : memref<1xf32, #tpu.memory_space<smem>>
    %27 = vector.broadcast %26 : f32 to vector<1x256xf32>
    %28 = arith.addf %25, %27 : vector<1x256xf32>
    %cst_18 = arith.constant 0.000000e+00 : f32
    %29 = vector.broadcast %cst_18 : f32 to vector<1x256xf32>
    %30 = arith.subf %29, %28 : vector<1x256xf32>
    %31 = math.exp %30 : vector<1x256xf32>
    %cst_19 = arith.constant 1.000000e+00 : f32
    %32 = vector.broadcast %cst_19 : f32 to vector<1x256xf32>
    %33 = arith.addf %32, %31 : vector<1x256xf32>
    %cst_20 = arith.constant 1.000000e+00 : f32
    %34 = vector.broadcast %cst_20 : f32 to vector<1x256xf32>
    %35 = arith.divf %34, %33 : vector<1x256xf32>
    %c0_21 = arith.constant 0 : index
    %c0_22 = arith.constant 0 : index
    %36 = vector.load %arg8[%c0_21, %c0_22] : memref<1x256xf32, #tpu.memory_space<vmem>>, vector<1x256xf32>
    tpu.vector_store %arg8[%c0_21, %c0_22], %35 {strides = array<i32>} : memref<1x256xf32, #tpu.memory_space<vmem>>, vector<1x256xf32>,
    return
  }
  func.func @transform_0(%arg0: i32) -> (i32, i32) {
    %c0_i32 = arith.constant 0 : i32
    %c0_i32_0 = arith.constant 0 : i32
    return %arg0, %c0_i32 : i32, i32
  }
  func.func @transform_1(%arg0: i32) -> (i32, i32) {
    %c0_i32 = arith.constant 0 : i32
    %c0_i32_0 = arith.constant 0 : i32
    %c0_i32_1 = arith.constant 0 : i32
    return %c0_i32, %c0_i32_0 : i32, i32
  }
  func.func @transform_2(%arg0: i32) -> (i32, i32) {
    %c0_i32 = arith.constant 0 : i32
    %c0_i32_0 = arith.constant 0 : i32
    %c0_i32_1 = arith.constant 0 : i32
    return %c0_i32, %c0_i32_0 : i32, i32
  }
  func.func @transform_3(%arg0: i32) -> (i32, i32) {
    %c0_i32 = arith.constant 0 : i32
    %c0_i32_0 = arith.constant 0 : i32
    %c0_i32_1 = arith.constant 0 : i32
    return %c0_i32, %c0_i32_0 : i32, i32
  }
  func.func @transform_4(%arg0: i32) -> (i32, i32) {
    %c0_i32 = arith.constant 0 : i32
    %c0_i32_0 = arith.constant 0 : i32
    %c0_i32_1 = arith.constant 0 : i32
    return %c0_i32, %c0_i32_0 : i32, i32
  }
  func.func @transform_5(%arg0: i32) -> (i32, i32) {
    %c0_i32 = arith.constant 0 : i32
    %c0_i32_0 = arith.constant 0 : i32
    %c0_i32_1 = arith.constant 0 : i32
    return %c0_i32, %c0_i32_0 : i32, i32
  }
  func.func @transform_6(%arg0: i32) -> i32 {
    %c0_i32 = arith.constant 0 : i32
    %c0_i32_0 = arith.constant 0 : i32
    return %c0_i32 : i32
  }
  func.func @transform_7(%arg0: i32) -> (i32, i32) {
    %c0_i32 = arith.constant 0 : i32
    %c0_i32_0 = arith.constant 0 : i32
    return %c0_i32, %arg0 : i32, i32
  }
}

</mosaic_0001>

<bundles_post_ra>
// kernel: tpu_custom_call.1
= control target key start
LH: loop header
LB: loop body
LE: loop exit
PB: predicated region body
PF: predicated region fallthrough
CT: control target
= control target key end

     0   :  { %s1790_s0 = inlined_call_operand.vmem [shape: f32[300,32], index: 0, kind: input, shape index: {}]   ;;  %s1791_s1 = inlined_call_operand.vmem [shape: bf16[32,128], index: 1, kind: input, shape index: {}]   ;;  %s1792_s2 = inlined_call_operand.vmem [shape: bf16[1,128], index: 2, kind: input, shape index: {}]   ;;  %s1793_s3 = inlined_call_operand.vmem [shape: bf16[128,128], index: 3, kind: input, shape index: {}]   ;;  %s1794_s4 = inlined_call_operand.vmem [shape: bf16[1,128], index: 4, kind: input, shape index: {}]   ;;  %s1795_s5 = inlined_call_operand.vmem [shape: bf16[1,128], index: 5, kind: input, shape index: {}]   ;;  %s1796_s6 = inlined_call_operand.<no memory space> [shape: f32[1], index: 6, kind: input, shape index: {}]   ;;  %s1797_s7 = inlined_call_operand.hbm [shape: f32[1,300], index: 7, kind: output, shape index: {}]  }
   0x1   :  { %12 = sst [smem:[#allocation2]] %s1796_s6 }
   0x2   :  { %13 = vsyncpa [#allocation4], 0 }
   0x3   :  { %15 = vsyncpa [#allocation4 + $0x1], 0  ;;  %s1491_s26 = smov 0   ;;  %s1493_s27 = smov 0  }
   0x4   :  { %s1495_s28 = smov 0   ;;  %s1497_s29 = smov 0  }
   0x5 LB: > { %s1512_s6 = sadd.s32 4294967295, %s1444_s29   ;;  %s1140_s30 = sadd.s32 4294967294, %s1444_s29   ;;  %s1444_s29 = sphi %s1497_s29, %s1803_s29   ;;  %s1440_s28 = sphi %s1495_s28, %s1802_s28   ;;  %s1436_s27 = sphi %s1493_s27, %s1801_s27   ;;  %s1432_s26 = sphi %s1491_s26, %s1800_s26  }
   0x6   : > { %s1516_s8 = sadd.s32 1, %s1444_s29   ;;  %s180_s9 = sadd.s32 1, %s1440_s28 }
   0x7   : > { %s177_s10 = ssub.s32 %s1444_s29, %s1516_s8  ;;  %p190_p0 = scmp.ne.s32.totalorder %s1440_s28, %s1436_s27 }
   0x8   : > { %p178_p1 = scmp.eq.s32.totalorder %s177_s10, 0  ;;  %p191_p2 = scmp.eq.s32.totalorder %s1512_s6, 1 }
   0x9   : > { %p196_p3 = scmp.ne.s32.totalorder %s1436_s27, %s1432_s26  ;;  %p197_p4 = scmp.eq.s32.totalorder %s1140_s30, 1 }
   0xa   : > { %s1527_s11 = scalar_select %p178_p1, %s1440_s28, %s180_s9  }
   0xb   : > { %p1529_p5 = por %p191_p2, %p190_p0  ;;  %p1533_p6 = por %p197_p4, %p196_p3 }
   0xc   : > { %p1143_p7 = scmp.ge.s32.totalorder %s1444_s29, 1  ;;  %p250_p8 = scmp.lt.s32.totalorder %s1444_s29, 3 }
   0xe   : > { %p251_p9 = pnand %p1143_p7, %p250_p8 }
   0xf   : > { %v1364_v0 = vld [vmem:[%s1791_s1] sm:$0xff] (!%p251_p9)   ;;  %s1543_s16 = sshll.u32 (!%p251_p9), %s1512_s6, 5  ;;  %v1365_v1 = vld [vmem:[%s1791_s1 + $0x8] sm:$0xff] (!%p251_p9)   ;;  %v1368_v4 = vld [vmem:[%s1793_s3 + $0x10] sm:$0xff] (!%p251_p9)   ;;  %vm371_vm0 = vcmask (!%p251_p9), 261120   ;;  %v601_v58 = vlaneseq (!%p251_p9)  ;;  %s283_s18 = sand.u32 (!%p251_p9), 1, %s1436_s27  }
  0x10   : > { %254 = sbr.rel (%p251_p9) target bundleno = 849 (0x351), region = 48  ;;  %p291_p10 = scmp.lt.s32.totalorder (!%p251_p9), %s1543_s16, 37  ;;  %1241 = vmatprep.subr.bf16.mxu0 (!%p251_p9), %v1364_v0  ;;  %v1366_v2 = vld [vmem:[%s1793_s3] sm:$0xff] (!%p251_p9)   ;;  %v1367_v3 = vld [vmem:[%s1793_s3 + $0x8] sm:$0xff] (!%p251_p9)   ;;  %v1369_v14 = vld [vmem:[%s1793_s3 + $0x18] sm:$0xff] (!%p251_p9)  }
  0x11   : > { %1242 = vmatpush3.bf16.msra.mxu0 (!%p251_p9), %v1364_v0  ;;  %1277 = vmatprep.subr.bf16.mxu1 (!%p251_p9), %v1366_v2  ;;  %v1370_v19 = vld [vmem:[%s1793_s3 + $0x20] sm:$0xff] (!%p251_p9)   ;;  %v1371_v55 = vld [vmem:[%s1793_s3 + $0x28] sm:$0xff] (!%p251_p9)   ;;  %v1372_v56 = vld [vmem:[%s1793_s3 + $0x30] sm:$0xff] (!%p251_p9)   ;;  %v1628_v59 = vshrl.u32 (!%p251_p9), %v601_v58, 7  ;;  %s983_s19 = sld [smem:[#allocation2]] (!%p251_p9)  ;;  %s1144_s20 = sshll.u32 (!%p251_p9), %s283_s18, 1 }
  0x12   : > { %1243 = vmatprep.subr.bf16.mxu0 (!%p251_p9), %v1365_v1  ;;  %1278 = vmatpush3.bf16.msra.mxu1 (!%p251_p9), %v1366_v2  ;;  %v1373_v57 = vld [vmem:[%s1793_s3 + $0x38] sm:$0xff] (!%p251_p9)   ;;  %v597_v60 = vld [vmem:[%s1792_s2] sm:$0x1] (!%p251_p9)  ;;  %s1736_s22 = scalar_lea.sflag (!%p251_p9), [#allocation4], %s283_s18 }
  0x13   : > { %1279 = vmatprep.subr.bf16.mxu1 (!%p251_p9), %v1367_v3  ;;  %v599_v61 = vpack.i.b16 (!%p251_p9), %v597_v60, %v597_v60  ;;  %v603_v62 = vsub.s32 (!%p251_p9), 0, %v1628_v59 }
  0x15   : > { %1244 = vmatpush3.bf16.msra.mxu0 (!%p251_p9), %v1365_v1  ;;  %v1636_v1 = vrot.slane (!%p251_p9), %v599_v61, %v603_v62 }
  0x16   : > { %1280 = vmatpush3.bf16.msra.mxu1 (!%p251_p9), %v1367_v3 }
  0x17   : > { %s292_s21 = scalar_select %p291_p10, %s1543_s16, 37  ;;  %1281 = vmatprep.subr.bf16.mxu1 %v1368_v4 }
  0x18   : > { %s1174_s23 = sshll.u32 (%p1529_p5), %s1512_s6, 1 }
  0x19   : > { %s1146_s24 = sshll.u32 %s292_s21, 3  ;;  %s285_s21 = scalar_lea.vmem [#allocation3], %s1144_s20 }
  0x1a   : > { %s1559_s9 = scalar_lea.vmem %s1790_s0, %s1146_s24  ;;  %1282 = vmatpush3.bf16.msra.mxu1 %v1368_v4  ;;  %s1070_s24 = ssub.s32 (%p1529_p5), 3, %s1174_s23 }
  0x1b   : > { %v307_v5 = vld [vmem:[%s1559_s9] sm:$0xff]  ;;  %v308_v6 = vld [vmem:[%s1559_s9 + $0x8] sm:$0xff]  ;;  %v309_v7 = vld [vmem:[%s1559_s9 + $0x10] sm:$0xff]  ;;  %1283 = vmatprep.subr.bf16.mxu1 %v1369_v14  ;;  %p1071_p11 = scmp.lt.s32.totalorder (%p1529_p5), %s1070_s24, 2 }
  0x1c   : > { %v339_v8 = vpack.c.bf16 %v308_v6, %v307_v5  ;;  %v310_v9 = vld [vmem:[%s1559_s9 + $0x18] sm:$0xff]  ;;  %v311_v10 = vld [vmem:[%s1559_s9 + $0x20] sm:$0xff]  ;;  %v312_v11 = vld [vmem:[%s1559_s9 + $0x28] sm:$0xff] }
  0x1d   : > { %v340_v12 = vpack.c.bf16 %v310_v9, %v309_v7  ;;  %v341_v13 = vpack.c.bf16 %v312_v11, %v311_v10  ;;  %v313_v15 = vld [vmem:[%s1559_s9 + $0x30] sm:$0xff]  ;;  %v314_v16 = vld [vmem:[%s1559_s9 + $0x38] sm:$0xff]  ;;  %v315_v17 = vld [vmem:[%s1559_s9 + $0x40] sm:$0xff] }
  0x1e   : > { %1245 = vmatprep.mubr.msk.bf16.mxu0 %vm371_vm0, %v339_v8  ;;  %v316_v18 = vld [vmem:[%s1559_s9 + $0x48] sm:$0xff]  ;;  %v342_v20 = vpack.c.bf16 %v314_v16, %v313_v15  ;;  %1284 = vmatpush3.bf16.msra.mxu1 %v1369_v14  ;;  %v317_v22 = vld [vmem:[%s1559_s9 + $0x50] sm:$0xff]  ;;  %v318_v23 = vld [vmem:[%s1559_s9 + $0x58] sm:$0xff] }
  0x1f   : > { %1246 = vmatmul.mubr.msk.bf16.vlgmr.msra.gmra.mrb[0].mxu0 %vm371_vm0, %v340_v12  ;;  %v343_v21 = vpack.c.bf16 %v316_v18, %v315_v17  ;;  %1285 = vmatprep.subr.bf16.mxu1 %v1370_v19  ;;  %v319_v24 = vld [vmem:[%s1559_s9 + $0x60] sm:$0xff]  ;;  %v320_v25 = vld [vmem:[%s1559_s9 + $0x68] sm:$0xff]  ;;  %v344_v26 = vpack.c.bf16 %v318_v23, %v317_v22  ;;  %v321_v28 = vld [vmem:[%s1559_s9 + $0x70] sm:$0xff] }
  0x20   : > { %1249 = vmatprep.mubr.msk.bf16.mxu0 %vm371_vm0, %v341_v13  ;;  %v345_v27 = vpack.c.bf16 %v320_v25, %v319_v24  ;;  %v322_v29 = vld [vmem:[%s1559_s9 + $0x78] sm:$0xff]  ;;  %v323_v30 = vld [vmem:[%s1559_s9 + $0x80] sm:$0xff]  ;;  %v324_v31 = vld [vmem:[%s1559_s9 + $0x88] sm:$0xff] }
  0x21   : > { %v346_v32 = vpack.c.bf16 %v322_v29, %v321_v28  ;;  %v347_v33 = vpack.c.bf16 %v324_v31, %v323_v30  ;;  %v325_v34 = vld [vmem:[%s1559_s9 + $0x90] sm:$0xff]  ;;  %v326_v35 = vld [vmem:[%s1559_s9 + $0x98] sm:$0xff]  ;;  %v327_v36 = vld [vmem:[%s1559_s9 + $0xa0] sm:$0xff] }
  0x22   : > { %1286 = vmatpush3.bf16.msra.mxu1 %v1370_v19  ;;  %v328_v37 = vld [vmem:[%s1559_s9 + $0xa8] sm:$0xff]  ;;  %v348_v38 = vpack.c.bf16 %v326_v35, %v325_v34  ;;  %v329_v40 = vld [vmem:[%s1559_s9 + $0xb0] sm:$0xff]  ;;  %v330_v41 = vld [vmem:[%s1559_s9 + $0xb8] sm:$0xff] }
  0x23   : > { %v349_v39 = vpack.c.bf16 %v328_v37, %v327_v36  ;;  %v331_v42 = vld [vmem:[%s1559_s9 + $0xc0] sm:$0xff]  ;;  %v332_v43 = vld [vmem:[%s1559_s9 + $0xc8] sm:$0xff]  ;;  %v350_v44 = vpack.c.bf16 %v330_v41, %v329_v40  ;;  %v333_v46 = vld [vmem:[%s1559_s9 + $0xd0] sm:$0xff]  ;;  %1287 = vmatprep.subr.bf16.mxu1 %v1371_v55 }
  0x24   : > { %v351_v45 = vpack.c.bf16 %v332_v43, %v331_v42  ;;  %v334_v47 = vld [vmem:[%s1559_s9 + $0xd8] sm:$0xff]  ;;  %v335_v48 = vld [vmem:[%s1559_s9 + $0xe0] sm:$0xff]  ;;  %v336_v49 = vld [vmem:[%s1559_s9 + $0xe8] sm:$0xff] }
  0x25   : > { %v352_v50 = vpack.c.bf16 %v334_v47, %v333_v46  ;;  %v353_v51 = vpack.c.bf16 %v336_v49, %v335_v48  ;;  %v337_v52 = vld [vmem:[%s1559_s9 + $0xf0] sm:$0xff]  ;;  %v338_v53 = vld [vmem:[%s1559_s9 + $0xf8] sm:$0xff] }
  0x26   : > { %v354_v54 = vpack.c.bf16 %v338_v53, %v337_v52  ;;  %1288 = vmatpush3.bf16.msra.mxu1 %v1371_v55 }
  0x27   : > { %1250 = vmatmul.mubr.msk.bf16.gmra.mrb[4].mxu0 %vm371_vm0, %v342_v20  ;;  %1289 = vmatprep.subr.bf16.mxu1 %v1372_v56 }
  0x28   : > { %1253 = vmatprep.mubr.msk.bf16.mxu0 %vm371_vm0, %v343_v21 }
  0x2a   : > { %1290 = vmatpush3.bf16.msra.mxu1 %v1372_v56 }
  0x2b   : > { %1291 = vmatprep.subr.bf16.mxu1 %v1373_v57 }
  0x2e   : > { %1292 = vmatpush3.bf16.msra.mxu1 %v1373_v57 }
  0x2f   : > { %1254 = vmatmul.mubr.msk.bf16.gmra.mrb[8].mxu0 %vm371_vm0, %v344_v26 }
  0x30   : > { %1257 = vmatprep.mubr.msk.bf16.mxu0 %vm371_vm0, %v345_v27 }
  0x37   : > { %1258 = vmatmul.mubr.msk.bf16.gmra.mrb[12].mxu0 %vm371_vm0, %v346_v32 }
  0x38   : > { %1261 = vmatprep.mubr.msk.bf16.mxu0 %vm371_vm0, %v347_v33 }
  0x3f   : > { %1262 = vmatmul.mubr.msk.bf16.gmra.mrb[16].mxu0 %vm371_vm0, %v348_v38 }
  0x40   : > { %1265 = vmatprep.mubr.msk.bf16.mxu0 %vm371_vm0, %v349_v39 }
  0x47   : > { %1266 = vmatmul.mubr.msk.bf16.gmra.mrb[20].mxu0 %vm371_vm0, %v350_v44 }
  0x48   : > { %1269 = vmatprep.mubr.msk.bf16.mxu0 %vm371_vm0, %v351_v45 }
  0x4f   : > { %1270 = vmatmul.mubr.msk.bf16.gmra.mrb[24].mxu0 %vm371_vm0, %v352_v50 }
  0x50   : > { %1273 = vmatprep.mubr.msk.bf16.mxu0 %vm371_vm0, %v353_v51 }
  0x57   : > { %1274 = vmatmul.mubr.msk.bf16.gmra.mrb[28].mxu0 %vm371_vm0, %v354_v54 }
  0xf2   : > { %v1247_v63 = vpop.f32.mrb[0].mxu0 }
  0xf3   : > { %v454_v0 = vpop.f32.mrb[1].mxu0 }
  0xf4   : > { %v1248_v2 = vpop.f32.mrb[2].mxu0 }
  0xf5   : > { %v582_v3 = vpack.c.bf16 %v1248_v2, %v1247_v63  ;;  %v457_v4 = vpop.f32.mrb[3].mxu0 }
  0xf6   : > { %v581_v5 = vpack.c.bf16 %v457_v4, %v454_v0 }
  0xf7   : > { %v606_v6 = vadd.bf16 %v1636_v1, %v582_v3 }
  0xf8   : > { %v605_v7 = vadd.bf16 %v1636_v1, %v581_v5 }
  0xf9   : > { %v638_v8 = vmul.bf16 1009007652, %v606_v6  ;;  %vm622_vm2 = vcmp.ge.bf16.partialorder %v606_v6, 0 }
  0xfa   : > { %v1251_v9 = vpop.f32.mrb[4].mxu0  ;;  %vm621_vm1 = vcmp.ge.bf16.partialorder %v605_v7, 0  ;;  %v637_v10 = vmul.bf16 1009007652, %v605_v7 }
  0xfb   : > { %v470_v11 = vpop.f32.mrb[5].mxu0  ;;  %v654_v16 = vsel %vm622_vm2, %v606_v6, %v638_v8 }
  0xfc   : > { %v1252_v12 = vpop.f32.mrb[6].mxu0  ;;  %v653_v13 = vsel %vm621_vm1, %v605_v7, %v637_v10 }
  0xfd   : > { %v584_v14 = vpack.c.bf16 %v1252_v12, %v1251_v9  ;;  %v473_v15 = vpop.f32.mrb[7].mxu0  ;;  %1293 = vmatprep.mubr.bf16.mxu1 %v653_v13 }
  0xfe   : > { %v583_v17 = vpack.c.bf16 %v473_v15, %v470_v11  ;;  %1294 = vmatmul.mubr.bf16.vlgmr.msra.gmra.mrb[0].mxu1 %v654_v16 }
  0xff   : > { %v608_v18 = vadd.bf16 %v1636_v1, %v584_v14 }
 0x100   : > { %v607_v19 = vadd.bf16 %v1636_v1, %v583_v17 }
 0x101   : > { %v640_v20 = vmul.bf16 1009007652, %v608_v18  ;;  %vm624_vm4 = vcmp.ge.bf16.partialorder %v608_v18, 0 }
 0x102   : > { %v1255_v21 = vpop.f32.mrb[8].mxu0  ;;  %vm623_vm3 = vcmp.ge.bf16.partialorder %v607_v19, 0  ;;  %v639_v22 = vmul.bf16 1009007652, %v607_v19 }
 0x103   : > { %v486_v23 = vpop.f32.mrb[9].mxu0  ;;  %v656_v28 = vsel %vm624_vm4, %v608_v18, %v640_v20 }
 0x104   : > { %v1256_v24 = vpop.f32.mrb[10].mxu0  ;;  %v655_v25 = vsel %vm623_vm3, %v607_v19, %v639_v22 }
 0x105   : > { %v586_v26 = vpack.c.bf16 %v1256_v24, %v1255_v21  ;;  %v489_v27 = vpop.f32.mrb[11].mxu0  ;;  %1297 = vmatprep.mubr.bf16.mxu1 %v655_v25 }
 0x106   : > { %v585_v29 = vpack.c.bf16 %v489_v27, %v486_v23  ;;  %1298 = vmatmul.mubr.bf16.gmra.mrb[4].mxu1 %v656_v28 }
 0x107   : > { %v610_v30 = vadd.bf16 %v1636_v1, %v586_v26 }
 0x108   : > { %v609_v31 = vadd.bf16 %v1636_v1, %v585_v29 }
 0x109   : > { %v642_v32 = vmul.bf16 1009007652, %v610_v30  ;;  %vm626_vm6 = vcmp.ge.bf16.partialorder %v610_v30, 0 }
 0x10a   : > { %v1259_v33 = vpop.f32.mrb[12].mxu0  ;;  %vm625_vm5 = vcmp.ge.bf16.partialorder %v609_v31, 0  ;;  %v641_v34 = vmul.bf16 1009007652, %v609_v31 }
 0x10b   : > { %v502_v35 = vpop.f32.mrb[13].mxu0  ;;  %v658_v40 = vsel %vm626_vm6, %v610_v30, %v642_v32 }
 0x10c   : > { %v1260_v36 = vpop.f32.mrb[14].mxu0  ;;  %v657_v37 = vsel %vm625_vm5, %v609_v31, %v641_v34 }
 0x10d   : > { %v588_v38 = vpack.c.bf16 %v1260_v36, %v1259_v33  ;;  %v505_v39 = vpop.f32.mrb[15].mxu0  ;;  %1301 = vmatprep.mubr.bf16.mxu1 %v657_v37  ;;  %v1657_v36 = vld [vmem:[%s1795_s5] sm:$0x1] }
 0x10e   : > { %v587_v41 = vpack.c.bf16 %v505_v39, %v502_v35  ;;  %1302 = vmatmul.mubr.bf16.gmra.mrb[8].mxu1 %v658_v40  ;;  %1239 = vmatprep.mubr.bf16.mxu0 %v1657_v36 }
 0x10f   : > { %v612_v42 = vadd.bf16 %v1636_v1, %v588_v38 }
 0x110   : > { %v611_v43 = vadd.bf16 %v1636_v1, %v587_v41 }
 0x111   : > { %v644_v44 = vmul.bf16 1009007652, %v612_v42  ;;  %vm628_vm8 = vcmp.ge.bf16.partialorder %v612_v42, 0 }
 0x112   : > { %v1263_v45 = vpop.f32.mrb[16].mxu0  ;;  %vm627_vm7 = vcmp.ge.bf16.partialorder %v611_v43, 0  ;;  %v643_v46 = vmul.bf16 1009007652, %v611_v43 }
 0x113   : > { %v518_v47 = vpop.f32.mrb[17].mxu0  ;;  %v660_v52 = vsel %vm628_vm8, %v612_v42, %v644_v44 }
 0x114   : > { %v1264_v48 = vpop.f32.mrb[18].mxu0  ;;  %v659_v49 = vsel %vm627_vm7, %v611_v43, %v643_v46 }
 0x115   : > { %v590_v50 = vpack.c.bf16 %v1264_v48, %v1263_v45  ;;  %v521_v51 = vpop.f32.mrb[19].mxu0  ;;  %1305 = vmatprep.mubr.bf16.mxu1 %v659_v49 }
 0x116   : > { %v589_v53 = vpack.c.bf16 %v521_v51, %v518_v47  ;;  %1306 = vmatmul.mubr.bf16.gmra.mrb[12].mxu1 %v660_v52 }
 0x117   : > { %v614_v54 = vadd.bf16 %v1636_v1, %v590_v50 }
 0x118   : > { %v613_v55 = vadd.bf16 %v1636_v1, %v589_v53 }
 0x119   : > { %v646_v56 = vmul.bf16 1009007652, %v614_v54  ;;  %vm630_vm10 = vcmp.ge.bf16.partialorder %v614_v54, 0 }
 0x11a   : > { %v1267_v57 = vpop.f32.mrb[20].mxu0  ;;  %vm629_vm9 = vcmp.ge.bf16.partialorder %v613_v55, 0  ;;  %v645_v60 = vmul.bf16 1009007652, %v613_v55 }
 0x11b   : > { %v534_v61 = vpop.f32.mrb[21].mxu0  ;;  %v662_v4 = vsel %vm630_vm10, %v614_v54, %v646_v56  ;;  %v910_v54 = vld [vmem:[%s1794_s4] sm:$0x1] }
 0x11c   : > { %v1268_v63 = vpop.f32.mrb[22].mxu0  ;;  %v661_v0 = vsel %vm629_vm9, %v613_v55, %v645_v60  ;;  %v912_v60 = vpack.i.b16 %v910_v54, %v910_v54 }
 0x11d   : > { %v592_v2 = vpack.c.bf16 %v1268_v63, %v1267_v57  ;;  %v537_v3 = vpop.f32.mrb[23].mxu0  ;;  %1309 = vmatprep.mubr.bf16.mxu1 %v661_v0 }
 0x11e   : > { %v591_v5 = vpack.c.bf16 %v537_v3, %v534_v61  ;;  %1310 = vmatmul.mubr.bf16.gmra.mrb[16].mxu1 %v662_v4 }
 0x11f   : > { %v616_v6 = vadd.bf16 %v1636_v1, %v592_v2  ;;  %v1695_v2 = vrot.slane %v912_v60, %v603_v62 }
 0x120   : > { %v615_v7 = vadd.bf16 %v1636_v1, %v591_v5 }
 0x121   : > { %vm632_vm11 = vcmp.ge.bf16.partialorder %v616_v6, 0  ;;  %v648_v8 = vmul.bf16 1009007652, %v616_v6 }
 0x122   : > { %vm631_vm12 = vcmp.ge.bf16.partialorder %v615_v7, 0  ;;  %v647_v9 = vmul.bf16 1009007652, %v615_v7  ;;  %v1271_v10 = vpop.f32.mrb[24].mxu0 }
 0x123   : > { %v664_v11 = vsel %vm632_vm11, %v616_v6, %v648_v8  ;;  %v550_v12 = vpop.f32.mrb[25].mxu0 }
 0x124   : > { %v663_v13 = vsel %vm631_vm12, %v615_v7, %v647_v9  ;;  %v1272_v14 = vpop.f32.mrb[26].mxu0 }
 0x125   : > { %1313 = vmatprep.mubr.bf16.mxu1 %v663_v13  ;;  %v594_v15 = vpack.c.bf16 %v1272_v14, %v1271_v10  ;;  %v553_v16 = vpop.f32.mrb[27].mxu0 }
 0x126   : > { %1314 = vmatmul.mubr.bf16.gmra.mrb[20].mxu1 %v664_v11  ;;  %v593_v17 = vpack.c.bf16 %v553_v16, %v550_v12 }
 0x127   : > { %v618_v18 = vadd.bf16 %v1636_v1, %v594_v15 }
 0x128   : > { %v617_v19 = vadd.bf16 %v1636_v1, %v593_v17 }
 0x129   : > { %vm634_vm13 = vcmp.ge.bf16.partialorder %v618_v18, 0  ;;  %v650_v20 = vmul.bf16 1009007652, %v618_v18 }
 0x12a   : > { %vm633_vm14 = vcmp.ge.bf16.partialorder %v617_v19, 0  ;;  %v649_v21 = vmul.bf16 1009007652, %v617_v19  ;;  %v1275_v22 = vpop.f32.mrb[28].mxu0 }
 0x12b   : > { %v666_v23 = vsel %vm634_vm13, %v618_v18, %v650_v20  ;;  %v566_v24 = vpop.f32.mrb[29].mxu0 }
 0x12c   : > { %v665_v25 = vsel %vm633_vm14, %v617_v19, %v649_v21  ;;  %v1276_v26 = vpop.f32.mrb[30].mxu0 }
 0x12d   : > { %1317 = vmatprep.mubr.bf16.mxu1 %v665_v25  ;;  %v596_v27 = vpack.c.bf16 %v1276_v26, %v1275_v22  ;;  %v569_v28 = vpop.f32.mrb[31].mxu0 }
 0x12e   : > { %1318 = vmatmul.mubr.bf16.gmra.mrb[24].mxu1 %v666_v23  ;;  %v595_v29 = vpack.c.bf16 %v569_v28, %v566_v24 }
 0x12f   : > { %v620_v30 = vadd.bf16 %v1636_v1, %v596_v27 }
 0x130   : > { %v619_v31 = vadd.bf16 %v1636_v1, %v595_v29 }
 0x131   : > { %vm636_vm15 = vcmp.ge.bf16.partialorder %v620_v30, 0  ;;  %v652_v32 = vmul.bf16 1009007652, %v620_v30 }
 0x132   : > { %vm635_vm0 = vcmp.ge.bf16.partialorder %v619_v31, 0  ;;  %v651_v33 = vmul.bf16 1009007652, %v619_v31 }
 0x133   : > { %v668_v34 = vsel %vm636_vm15, %v620_v30, %v652_v32 }
 0x134   : > { %v667_v35 = vsel %vm635_vm0, %v619_v31, %v651_v33 }
 0x135   : > { %1321 = vmatprep.mubr.bf16.mxu1 %v667_v35 }
 0x136   : > { %1322 = vmatmul.mubr.bf16.gmra.mrb[28].mxu1 %v668_v34 }
 0x1d1   : > { %v1295_v37 = vpop.f32.mrb[0].mxu1 }
 0x1d2   : > { %v767_v38 = vpop.f32.mrb[1].mxu1 }
 0x1d3   : > { %v1296_v39 = vpop.f32.mrb[2].mxu1 }
 0x1d4   : > { %v895_v40 = vpack.c.bf16 %v1296_v39, %v1295_v37  ;;  %v770_v1 = vpop.f32.mrb[3].mxu1 }
 0x1d5   : > { %v894_v41 = vpack.c.bf16 %v770_v1, %v767_v38 }
 0x1d6   : > { %v919_v18 = vadd.bf16 %v1695_v2, %v895_v40 }
 0x1d7   : > { %v918_v6 = vadd.bf16 %v1695_v2, %v894_v41 }
 0x1d8   : > { %v951_v25 = vmul.bf16 1009007652, %v919_v18  ;;  %vm935_vm4 = vcmp.ge.bf16.partialorder %v919_v18, 0 }
 0x1d9   : > { %v1660_v42 = vpop.f32.mrb[4].mxu1  ;;  %v950_v12 = vmul.bf16 1009007652, %v918_v6  ;;  %vm934_vm1 = vcmp.ge.bf16.partialorder %v918_v6, 0 }
 0x1da   : > { %v783_v43 = vpop.f32.mrb[5].mxu1  ;;  %v967_v31 = vsel %vm935_vm4, %v919_v18, %v951_v25 }
 0x1db   : > { %v1662_v44 = vpop.f32.mrb[6].mxu1  ;;  %v966_v21 = vsel %vm934_vm1, %v918_v6, %v950_v12  ;;  %vm1058_vm1 = vcmp.lt.s32.totalorder %v601_v58, 256 }
 0x1dc   : > { %v897_v45 = vpack.c.bf16 %v1662_v44, %v1660_v42  ;;  %v786_v46 = vpop.f32.mrb[7].mxu1 }
 0x1dd   : > { %v896_v47 = vpack.c.bf16 %v786_v46, %v783_v43 }
 0x1de   : > { %v921_v43 = vadd.bf16 %v1695_v2, %v897_v45 }
 0x1df   : > { %v920_v30 = vadd.bf16 %v1695_v2, %v896_v47 }
 0x1e0   : > { %vm937_vm8 = vcmp.ge.bf16.partialorder %v921_v43, 0 }
 0x1e1   : > { %v1666_v48 = vpop.f32.mrb[8].mxu1  ;;  %v952_v38 = vmul.bf16 1009007652, %v920_v30  ;;  %vm936_vm6 = vcmp.ge.bf16.partialorder %v920_v30, 0 }
 0x1e2   : > { %v1668_v49 = vpop.f32.mrb[9].mxu1 }
 0x1e3   : > { %v1670_v50 = vpop.f32.mrb[10].mxu1  ;;  %v968_v46 = vsel %vm936_vm6, %v920_v30, %v952_v38 }
 0x1e4   : > { %v899_v51 = vpack.c.bf16 %v1670_v50, %v1666_v48  ;;  %v1674_v52 = vpop.f32.mrb[11].mxu1 }
 0x1e5   : > { %v898_v53 = vpack.c.bf16 %v1674_v52, %v1668_v49 }
 0x1e7   : > { %v922_v42 = vadd.bf16 %v1695_v2, %v898_v53 }
 0x1e9   : > { %v1681_v55 = vpop.f32.mrb[12].mxu1  ;;  %vm938_vm10 = vcmp.ge.bf16.partialorder %v922_v42, 0 }
 0x1ea   : > { %v1683_v56 = vpop.f32.mrb[13].mxu1 }
 0x1eb   : > { %v1685_v57 = vpop.f32.mrb[14].mxu1 }
 0x1ec   : > { %v901_v61 = vpack.c.bf16 %v1685_v57, %v1681_v55  ;;  %v1689_v63 = vpop.f32.mrb[15].mxu1 }
 0x1ed   : > { %v900_v0 = vpack.c.bf16 %v1689_v63, %v1683_v56 }
 0x1f1   : > { %v1311_v3 = vpop.f32.mrb[16].mxu1 }
 0x1f2   : > { %v831_v4 = vpop.f32.mrb[17].mxu1 }
 0x1f3   : > { %v1312_v5 = vpop.f32.mrb[18].mxu1 }
 0x1f4   : > { %v903_v7 = vpack.c.bf16 %v1312_v5, %v1311_v3  ;;  %v834_v8 = vpop.f32.mrb[19].mxu1  ;;  %v953_v5 = vmul.bf16 1009007652, %v921_v43 }
 0x1f5   : > { %v902_v9 = vpack.c.bf16 %v834_v8, %v831_v4  ;;  %v954_v8 = vmul.bf16 1009007652, %v922_v42 }
 0x1f6   : > { %v927_v10 = vadd.bf16 %v1695_v2, %v903_v7  ;;  %v969_v44 = vsel %vm937_vm8, %v921_v43, %v953_v5 }
 0x1f7   : > { %v926_v11 = vadd.bf16 %v1695_v2, %v902_v9 }
 0x1f8   : > { %v959_v15 = vmul.bf16 1009007652, %v927_v10  ;;  %vm943_vm3 = vcmp.ge.bf16.partialorder %v927_v10, 0 }
 0x1f9   : > { %v1315_v13 = vpop.f32.mrb[20].mxu1  ;;  %vm942_vm2 = vcmp.ge.bf16.partialorder %v926_v11, 0  ;;  %v958_v14 = vmul.bf16 1009007652, %v926_v11 }
 0x1fa   : > { %v847_v62 = vpop.f32.mrb[21].mxu1  ;;  %v975_v23 = vsel %vm943_vm3, %v927_v10, %v959_v15  ;;  %v923_v10 = vadd.bf16 %v1695_v2, %v899_v51 }
 0x1fb   : > { %v1316_v16 = vpop.f32.mrb[22].mxu1  ;;  %v974_v17 = vsel %vm942_vm2, %v926_v11, %v958_v14  ;;  %v970_v11 = vsel %vm938_vm10, %v922_v42, %v954_v8 }
 0x1fc   : > { %v905_v19 = vpack.c.bf16 %v1316_v16, %v1315_v13  ;;  %v850_v20 = vpop.f32.mrb[23].mxu1  ;;  %1223 = vmatprep.subr.bf16.mxu0 %v974_v17  ;;  %v955_v53 = vmul.bf16 1009007652, %v923_v10  ;;  %vm939_vm12 = vcmp.ge.bf16.partialorder %v923_v10, 0  ;;  %v924_v13 = vadd.bf16 %v1695_v2, %v900_v0 }
 0x1fd   : > { %v904_v22 = vpack.c.bf16 %v850_v20, %v847_v62  ;;  %1224 = vmatpush3.bf16.xpose.msra.mxu0 %v966_v21  ;;  %v925_v62 = vadd.bf16 %v1695_v2, %v901_v61  ;;  %v984_v17 = vstv %s983_s19 }
 0x1fe   : > { %1225 = vmatprep.subr.bf16.mxu0 %v975_v23  ;;  %v929_v34 = vadd.bf16 %v1695_v2, %v905_v19  ;;  %v971_v14 = vsel %vm939_vm12, %v923_v10, %v955_v53  ;;  %v956_v51 = vmul.bf16 1009007652, %v924_v13  ;;  %vm940_vm14 = vcmp.ge.bf16.partialorder %v924_v13, 0 }
 0x1ff   : > { %v928_v24 = vadd.bf16 %v1695_v2, %v904_v22  ;;  %v957_v63 = vmul.bf16 1009007652, %v925_v62  ;;  %vm941_vm0 = vcmp.ge.bf16.partialorder %v925_v62, 0 }
 0x200   : > { %v961_v39 = vmul.bf16 1009007652, %v929_v34  ;;  %vm945_vm7 = vcmp.ge.bf16.partialorder %v929_v34, 0  ;;  %v972_v16 = vsel %vm940_vm14, %v924_v13, %v956_v51 }
 0x201   : > { %v1319_v26 = vpop.f32.mrb[24].mxu1  ;;  %v960_v27 = vmul.bf16 1009007652, %v928_v24  ;;  %vm944_vm5 = vcmp.ge.bf16.partialorder %v928_v24, 0  ;;  %v973_v0 = vsel %vm941_vm0, %v925_v62, %v957_v63 }
 0x202   : > { %v863_v28 = vpop.f32.mrb[25].mxu1  ;;  %v977_v3 = vsel %vm945_vm7, %v929_v34, %v961_v39 }
 0x203   : > { %v1320_v29 = vpop.f32.mrb[26].mxu1  ;;  %v976_v35 = vsel %vm944_vm5, %v928_v24, %v960_v27  ;;  %v1446_v27 = vmov 1966171168  }
 0x204   : > { %v907_v32 = vpack.c.bf16 %v1320_v29, %v1319_v26  ;;  %v866_v33 = vpop.f32.mrb[27].mxu1 }
 0x205   : > { %1226 = vmatpush3.bf16.xpose.msra.mxu0 %v967_v31  ;;  %v906_v37 = vpack.c.bf16 %v866_v33, %v863_v28  ;;  %v1042_v28 = vunpack.c.l.s4 %v1446_v27 }
 0x206   : > { %1227 = vmatprep.subr.bf16.mxu0 %v976_v35  ;;  %v931_v45 = vadd.bf16 %v1695_v2, %v907_v32 }
 0x207   : > { %v930_v60 = vadd.bf16 %v1695_v2, %v906_v37  ;;  %v1043_v29 = vunpack.c.0.s8 %v1042_v28 }
 0x208   : > { %v963_v9 = vmul.bf16 1009007652, %v931_v45  ;;  %vm947_vm11 = vcmp.ge.bf16.partialorder %v931_v45, 0 }
 0x209   : > { %v1323_v40 = vpop.f32.mrb[28].mxu1  ;;  %v962_v6 = vmul.bf16 1009007652, %v930_v60  ;;  %vm946_vm9 = vcmp.ge.bf16.partialorder %v930_v60, 0  ;;  %v1046_v31 = vsub.s32 %v1043_v29, %v1628_v59 }
 0x20a   : > { %v879_v1 = vpop.f32.mrb[29].mxu1  ;;  %v979_v52 = vsel %vm947_vm11, %v931_v45, %v963_v9 }
 0x20b   : > { %v1324_v41 = vpop.f32.mrb[30].mxu1  ;;  %v978_v7 = vsel %vm946_vm9, %v930_v60, %v962_v6 }
 0x20c   : > { %v909_v47 = vpack.c.bf16 %v1324_v41, %v1323_v40  ;;  %v882_v54 = vpop.f32.mrb[31].mxu1 }
 0x20d   : > { %1228 = vmatpush3.bf16.xpose.msra.mxu0 %v968_v46  ;;  %v908_v4 = vpack.c.bf16 %v882_v54, %v879_v1 }
 0x20e   : > { %1229 = vmatprep.subr.bf16.mxu0 %v977_v3  ;;  %v933_v48 = vadd.bf16 %v1695_v2, %v909_v47 }
 0x20f   : > { %v932_v49 = vadd.bf16 %v1695_v2, %v908_v4 }
 0x210   : > { %v965_v15 = vmul.bf16 1009007652, %v933_v48  ;;  %vm949_vm15 = vcmp.ge.bf16.partialorder %v933_v48, 0 }
 0x211   : > { %v964_v12 = vmul.bf16 1009007652, %v932_v49  ;;  %vm948_vm13 = vcmp.ge.bf16.partialorder %v932_v49, 0 }
 0x212   : > { %v981_v56 = vsel %vm949_vm15, %v933_v48, %v965_v15 }
 0x213   : > { %v980_v50 = vsel %vm948_vm13, %v932_v49, %v964_v12 }
 0x215   : > { %1230 = vmatpush3.bf16.xpose.msra.mxu0 %v969_v44 }
 0x216   : > { %1231 = vmatprep.subr.bf16.mxu0 %v978_v7 }
 0x21d   : > { %1232 = vmatpush3.bf16.xpose.msra.mxu0 %v970_v11 }
 0x21e   : > { %1233 = vmatprep.subr.bf16.mxu0 %v979_v52 }
 0x225   : > { %1234 = vmatpush3.bf16.xpose.msra.mxu0 %v971_v14 }
 0x226   : > { %1235 = vmatprep.subr.bf16.mxu0 %v980_v50 }
 0x22d   : > { %1236 = vmatpush3.bf16.xpose.msra.mxu0 %v972_v16 }
 0x22e   : > { %1237 = vmatprep.subr.bf16.mxu0 %v981_v56 }
 0x235   : > { %1238 = vmatpush3.bf16.xpose.msra.mxu0 %v973_v0 }
 0x23c   : > { %1240 = vmatmul.mubr.bf16.vlgmr.msra.gmra.mrb[32].mxu0 %v1657_v36 }
 0x30f   : > { %v1019_v18 = vpop.f32.mrb[32].mxu0 }
 0x310   : > { %v1020_v19 = vadd.f32 %v1019_v18, %v984_v17  ;;  %v1021_v20 = vpop.f32.mrb[33].mxu0 }
 0x311   : > { %v1022_v21 = vadd.f32 %v1021_v20, %v984_v17  ;;  %v1023_v55 = vpop.f32.mrb[34].mxu0 }
 0x312   : > { %v1026_v57 = vsub.f32 0.0, %v1020_v19  ;;  %v1024_v61 = vpop.f32.mrb[35].mxu0 }
 0x313   : > { %v1027_v2 = vsub.f32 0.0, %v1022_v21 }
 0x314   : > { %v1028_v22 = vmul.f32 1.442695, %v1026_v57 }
 0x315   : > { %v1030_v23 = vmul.f32 1.442695, %v1027_v2 }
 0x316   : > { %1374 = vpow2.f32 %v1028_v22 }
 0x317   : > { %1376 = vpow2.f32 %v1030_v23 }
 0x320   : > { %v1375_v24 = vpop.eup %1374 }
 0x321   : > { %v1377_v25 = vpop.eup %1376  ;;  %v1032_v26 = vadd.f32 1.0, %v1375_v24 }
 0x322   : > { %v1033_v36 = vadd.f32 1.0, %v1377_v25 }
 0x323   : > { %1378 = vrcp.f32 %v1032_v26 }
 0x324   : > { %1380 = vrcp.f32 %v1033_v36 }
 0x32d   : > { %v1379_v30 = vpop.eup %1378 }
 0x32e   : > { %v1381_v32 = vpop.eup %1380 }
 0x32f   : > { %v1040_v33 = vcombine.low %v1379_v30, %v1381_v32  ;;  %1068 = sbr.rel (!%p1529_p5) target bundleno = 849 (0x351), region = 52 }
 0x331   : > { %v1047_v34 = vrot.slane %v1040_v33, %v1046_v31 }
 0x333   : > { %v1054_v35 = vrot.slane %v1047_v34, %v1046_v31 }
 0x335   : > { %1060 = vst.msk [vmem:[%s285_s21] sm:$0x3] %vm1058_vm1, %v1054_v35 }
 0x336   : > { %s1805_s24 = smov (!%p1071_p11, %s1070_s24), 2 }
 0x337   : > { %s1741_s25 = sshll.u32 %s1805_s24, 4 }
 0x338   : > { %s1075_s30 = ssub.s32 32, %s1741_s25 }
 0x339   : > { %1076 = vsyncadd %s1736_s22, %s1075_s30  ;;  %p1176_p12 = scmp.ne.s32.totalorder %s1741_s25, 0  ;;  %s1750_s12 = scalar_lea.hbm %s1797_s7, %s1543_s16 }
 0x33a   : > { %s1081_s14 = sshll.u32 %s285_s21, 4  ;;  %s1447_s15 = smov [#allocation3]   ;;  %s1082_s14 = int_to_ptr.vmem [resolvable:$true] %s1081_s14 }
 0x33b   : > { %s1382_s6 = scalar_lea.vmem %s1082_s14, %s1741_s25  ;;  %s1386_s17 = sshll.u32 %s1447_s15, 4  ;;  %s1387_s17 = int_to_ptr.vmem [resolvable:$false] %s1386_s17 }
 0x33c   : > { %p1383_p13 = scmp.ne.s32.totalorder %s1082_s14, %s1382_s6  ;;  %s1388_s18 = scalar_lea.vmem %s1387_s17, 64 }
 0x33d   : > { %p1389_p2 = scmp.lt.s32.totalorder %s1082_s14, %s1387_s17  ;;  %p1390_p3 = scmp.lt.s32.totalorder %s1388_s18, %s1382_s6 }
 0x33e   : > { %p1384_p0 = pnand %p1383_p13, %p1176_p12 }
 0x33f   : > { %p1391_p4 = por %p1390_p3, %p1389_p2 }
 0x340   : > { %p1385_p1 = pneg %p1384_p0 }
 0x342   : > { %p1392_p5 = pnand %p1391_p4, %p1385_p1 }
 0x344   : > { %1395 = shalt.err (!%p1392_p5)
}
 0x345   : > { %s1396_s16 = scalar_lea.hbm %s1750_s12, %s1741_s25  ;;  %s1400_s21 = scalar_lea.hbm %s1797_s7, 48 }
 0x346   : > { %p1397_p7 = scmp.ne.s32.totalorder %s1750_s12, %s1396_s16  ;;  %p1401_p10 = scmp.lt.u32.totalorder %s1750_s12, %s1797_s7 }
 0x347   : > { %p1402_p11 = scmp.lt.u32.totalorder %s1400_s21, %s1396_s16  ;;  %p1404_p0 = scmp.lt.u32.totalorder %s1396_s16, %s1750_s12 }
 0x348   : > { %p1398_p8 = pnand %p1397_p7, %p1176_p12 }
 0x349   : > { %p1403_p13 = por %p1402_p11, %p1401_p10 }
 0x34a   : > { %p1399_p9 = pneg %p1398_p8 }
 0x34b   : > { %p1405_p1 = por %p1404_p0, %p1403_p13 }
 0x34d   : > { %p1406_p2 = pnand %p1405_p1, %p1399_p9 }
 0x34f   : > { %1409 = shalt.err (!%p1406_p2)
}
 0x350   : > { %1084 = dma.vmem_to_hbm [thread:$0]  (%p1176_p12), %s1082_s14, %s1741_s25, %s1750_s12, %s1736_s22  }
 0x351 PF: > { %p1330_p3 = scmp.ge.s32.totalorder %s1444_s29, 2  ;;  %s1093_s30 = sand.u32 1, %s1432_s26  }
 0x352   : > { %s1094_s9 = scalar_lea.sflag [#allocation4], %s1093_s30 }
 0x353   : > { %p1327_p4 = pnand %p1330_p3, %p1533_p6 }
 0x355   : > { %1427 = dma.done.wait (!%p1327_p4), %s1094_s9, 32  }
 0x356   : > { %1429 = vsyncadd (!%p1327_p4), %s1094_s9, 4294967264  ;;  %p18_p5 = scmp.ge.s32.totalorder %s1516_s8, 4   ;;  %s1800_s26 = smov %s1436_s27 }
 0x357   : > { %s1801_s27 = smov %s1440_s28  ;;  %s1802_s28 = smov %s1527_s11 }
 0x358   : > { %s1803_s29 = smov %s1516_s8  ;;  %20 = sbr.rel (!%p18_p5) target bundleno = 5 (0x5), region = 83 }
 0x35f   :  { %1099 = vsyncpa [#allocation4], 1 }
 0x360   :  { %1101 = vsyncpa [#allocation4 + $0x1], 1 }

</bundles_post_ra>
